<compile_context>
chip_gen: v5e
topology: v5e:2x2
jax: 0.10.0
libtpu: 0.0.40
codegen_flags: <defaults>
</compile_context>

<pallas_src>
import jax
import jax.numpy as jnp
from jax.experimental import pallas as pl
from jax.experimental.pallas import tpu as pltpu

_SQRT_HALF = 0.7071067811865476
_LN_EPS = 1e-5


def _erf(x):
    # Abramowitz & Stegun 7.1.26 rational approximation, |error| <= 1.5e-7.
    p = 0.3275911
    a1, a2, a3, a4, a5 = (0.254829592, -0.284496736, 1.421413741,
                          -1.453152027, 1.061405429)
    ax = jnp.abs(x)
    t = 1.0 / (1.0 + p * ax)
    poly = ((((a5 * t + a4) * t + a3) * t + a2) * t + a1) * t
    y = 1.0 - poly * jnp.exp(-(ax * ax))
    return jnp.where(x < 0, -y, y)


def _gelu(x):
    # Exact GELU (PyTorch nn.GELU() default): x * Phi(x).
    return 0.5 * x * (1.0 + _erf(x * _SQRT_HALF))


def _predictor_lg_kernel(x_ref, w1_ref, b1_ref, g_ref, be_ref, w2_ref, b2_ref,
                         w3_ref, b3_ref, w4_ref, b4_ref, w5_ref, b5_ref, o_ref):
    n_tok, c = x_ref.shape
    c_half = c // 2
    inv_c = 1.0 / c
    inv_n = 1.0 / n_tok

    x = x_ref[...].astype(jnp.float32)                                  # (N, C)

    # ---- in_conv: Linear -> GELU -> LayerNorm -> Linear --------------------
    h = jnp.dot(x, w1_ref[...].astype(jnp.float32),
                preferred_element_type=jnp.float32)
    h = _gelu(h + b1_ref[...].astype(jnp.float32))

    mu = jnp.sum(h, axis=-1, keepdims=True) * inv_c
    d = h - mu
    var = jnp.sum(d * d, axis=-1, keepdims=True) * inv_c
    h = d * jax.lax.rsqrt(var + _LN_EPS)
    h = h * g_ref[...].astype(jnp.float32) + be_ref[...].astype(jnp.float32)

    h = jnp.dot(h, w2_ref[...].astype(jnp.float32),
                preferred_element_type=jnp.float32) + b2_ref[...].astype(jnp.float32)

    # ---- local / global split (global = mean over the token axis) ----------
    local_x = h[:, :c_half]                                             # (N, C/2)
    global_x = jnp.sum(h[:, c_half:], axis=0, keepdims=True) * inv_n    # (1, C/2)

    # ---- out_conv -----------------------------------------------------------
    # concat([local, bcast(global)]) @ W3 == local @ W3[:C/2] + global @ W3[C/2:]
    y = (jnp.dot(local_x, w3_ref[:c_half, :].astype(jnp.float32),
                 preferred_element_type=jnp.float32)
         + jnp.dot(global_x, w3_ref[c_half:, :].astype(jnp.float32),
                   preferred_element_type=jnp.float32)
         + b3_ref[...].astype(jnp.float32))
    y = _gelu(y)
    y = _gelu(jnp.dot(y, w4_ref[...].astype(jnp.float32),
                      preferred_element_type=jnp.float32)
              + b4_ref[...].astype(jnp.float32))
    y = jnp.dot(y, w5_ref[...].astype(jnp.float32),
                preferred_element_type=jnp.float32) + b5_ref[...].astype(jnp.float32)

    o_ref[...] = y.astype(o_ref.dtype)


def predictor_lg(x, params):
    """x: (B, N_tok, C) -> (B, N_tok, 2), matching PredictorLG.forward."""
    w1, b1, gamma, beta, w2, b2, w3, b3, w4, b4, w5, b5 = params
    B, n_tok, C = x.shape
    param_list = [w1, b1, gamma, beta, w2, b2, w3, b3, w4, b4, w5, b5]

    x_spec = pl.BlockSpec((None, n_tok, C), lambda b: (b, 0, 0))
    param_specs = [pl.BlockSpec(p.shape, lambda b: (0, 0)) for p in param_list]
    out_spec = pl.BlockSpec((None, n_tok, 2), lambda b: (b, 0, 0))

    # Rough per-step VMEM footprint: double-buffered x/out tiles, resident
    # params, and a few f32 activation temporaries.  Only raise the scoped
    # limit when needed; never past v7x's 64 MiB physical VMEM.
    f32b = 4
    param_bytes = sum(int(p.size) * f32b for p in param_list)
    step_bytes = param_bytes + f32b * (2 * n_tok * C        # x  (double-buffered)
                                       + 2 * n_tok * 2      # out (double-buffered)
                                       + 6 * n_tok * C)     # f32 temporaries
    cp_kwargs = dict(dimension_semantics=("parallel",))
    if step_bytes > (32 << 20):
        cp_kwargs["vmem_limit_bytes"] = min(2 * step_bytes, 64 << 20)

    return pl.pallas_call(
        _predictor_lg_kernel,
        out_shape=jax.ShapeDtypeStruct((B, n_tok, 2), x.dtype),
        grid_spec=pltpu.PrefetchScalarGridSpec(
            num_scalar_prefetch=0,
            grid=(B,),
            in_specs=[x_spec] + param_specs,
            out_specs=out_spec,
        ),
        compiler_params=pltpu.CompilerParams(**cp_kwargs),
    )(x, *param_list)


def _predictor_lg_ref(x, params):
    """Plain-JAX reference mirroring the PyTorch forward (same exact GELU)."""
    w1, b1, gamma, beta, w2, b2, w3, b3, w4, b4, w5, b5 = params
    hp = jax.lax.Precision.HIGHEST
    h = _gelu(jnp.matmul(x, w1, precision=hp) + b1)
    mu = jnp.mean(h, axis=-1, keepdims=True)
    var = jnp.mean((h - mu) ** 2, axis=-1, keepdims=True)
    h = (h - mu) / jnp.sqrt(var + _LN_EPS) * gamma + beta
    h = jnp.matmul(h, w2, precision=hp) + b2
    Bsz, n_tok, C = h.shape
    local = h[..., :C // 2]
    glob = jnp.mean(h[..., C // 2:], axis=1, keepdims=True)
    feat = jnp.concatenate(
        [local, jnp.broadcast_to(glob, (Bsz, n_tok, C // 2))], axis=-1)
    y = _gelu(jnp.matmul(feat, w3, precision=hp) + b3)
    y = _gelu(jnp.matmul(y, w4, precision=hp) + b4)
    return jnp.matmul(y, w5, precision=hp) + b5


if __name__ == "__main__":
    key = jax.random.PRNGKey(0)
    B, n_tok, C = 2, 8, 32          # small demo shapes (embed_dim=384 in prod)
    ks = jax.random.split(key, 13)

    def linear(kw, kb, din, dout):
        w = jax.random.normal(kw, (din, dout), jnp.float32) / (din ** 0.5)
        b = 0.02 * jax.random.normal(kb, (1, dout), jnp.float32)
        return w, b

    x = jax.random.normal(ks[0], (B, n_tok, C), dtype=jnp.float32)
    w1, b1 = linear(ks[1], ks[2], C, C)
    gamma = 1.0 + 0.02 * jax.random.normal(ks[3], (1, C), jnp.float32)
    beta = 0.02 * jax.random.normal(ks[4], (1, C), jnp.float32)
    w2, b2 = linear(ks[5], ks[6], C, C)
    w3, b3 = linear(ks[7], ks[8], C, C // 2)
    w4, b4 = linear(ks[9], ks[10], C // 2, C // 4)
    w5, b5 = linear(ks[11], ks[12], C // 4, 2)
    params = (w1, b1, gamma, beta, w2, b2, w3, b3, w4, b4, w5, b5)

    out = predictor_lg(x, params)
    out = jax.block_until_ready(out)

    ref = _predictor_lg_ref(x, params)
    assert out.shape == (B, n_tok, 2)
    max_err = float(jnp.max(jnp.abs(out - ref)))
    assert jnp.allclose(out, ref, atol=1e-3, rtol=1e-3), f"max |err| = {max_err}"
    print("KERNEL_OK")
</pallas_src>

<mosaic_0001>
module attributes {stable_mosaic.version = 11 : i64} {
  func.func @_predictor_lg_kernel(%arg0: i32, %arg1: memref<1x8x32xf32, #tpu.memory_space<vmem>>, %arg2: memref<32x32xf32, #tpu.memory_space<vmem>>, %arg3: memref<1x32xf32, #tpu.memory_space<vmem>>, %arg4: memref<1x32xf32, #tpu.memory_space<vmem>>, %arg5: memref<1x32xf32, #tpu.memory_space<vmem>>, %arg6: memref<32x32xf32, #tpu.memory_space<vmem>>, %arg7: memref<1x32xf32, #tpu.memory_space<vmem>>, %arg8: memref<32x16xf32, #tpu.memory_space<vmem>>, %arg9: memref<1x16xf32, #tpu.memory_space<vmem>>, %arg10: memref<16x8xf32, #tpu.memory_space<vmem>>, %arg11: memref<1x8xf32, #tpu.memory_space<vmem>>, %arg12: memref<8x2xf32, #tpu.memory_space<vmem>>, %arg13: memref<1x2xf32, #tpu.memory_space<vmem>>, %arg14: memref<1x8x2xf32, #tpu.memory_space<vmem>>) attributes {dimension_semantics = [#tpu.dimension_semantics<parallel>], iteration_bounds = array<i64: 2>, scalar_prefetch = 0 : i64, scratch_operands = 0 : i64, tpu.core_type = #tpu.core_type<tc>, window_params = [{transform_indices = @transform_0, window_bounds = array<i64: 1, 8, 32>}, {pipeline_mode = #tpu.pipeline_mode<synchronous>, transform_indices = @transform_1, window_bounds = array<i64: 32, 32>}, {pipeline_mode = #tpu.pipeline_mode<synchronous>, transform_indices = @transform_2, window_bounds = array<i64: 1, 32>}, {pipeline_mode = #tpu.pipeline_mode<synchronous>, transform_indices = @transform_3, window_bounds = array<i64: 1, 32>}, {pipeline_mode = #tpu.pipeline_mode<synchronous>, transform_indices = @transform_4, window_bounds = array<i64: 1, 32>}, {pipeline_mode = #tpu.pipeline_mode<synchronous>, transform_indices = @transform_5, window_bounds = array<i64: 32, 32>}, {pipeline_mode = #tpu.pipeline_mode<synchronous>, transform_indices = @transform_6, window_bounds = array<i64: 1, 32>}, {pipeline_mode = #tpu.pipeline_mode<synchronous>, transform_indices = @transform_7, window_bounds = array<i64: 32, 16>}, {pipeline_mode = #tpu.pipeline_mode<synchronous>, transform_indices = @transform_8, window_bounds = array<i64: 1, 16>}, {pipeline_mode = #tpu.pipeline_mode<synchronous>, transform_indices = @transform_9, window_bounds = array<i64: 16, 8>}, {pipeline_mode = #tpu.pipeline_mode<synchronous>, transform_indices = @transform_10, window_bounds = array<i64: 1, 8>}, {pipeline_mode = #tpu.pipeline_mode<synchronous>, transform_indices = @transform_11, window_bounds = array<i64: 8, 2>}, {pipeline_mode = #tpu.pipeline_mode<synchronous>, transform_indices = @transform_12, window_bounds = array<i64: 1, 2>}, {transform_indices = @transform_13, window_bounds = array<i64: 1, 8, 2>}]} {
    %c0 = arith.constant 0 : index
    %c0_0 = arith.constant 0 : index
    %c0_1 = arith.constant 0 : index
    %0 = vector.load %arg1[%c0, %c0_0, %c0_1] : memref<1x8x32xf32, #tpu.memory_space<vmem>>, vector<1x8x32xf32>
    %1 = vector.shape_cast %0 : vector<1x8x32xf32> to vector<8x32xf32>
    %c0_2 = arith.constant 0 : index
    %c0_3 = arith.constant 0 : index
    %2 = vector.load %arg2[%c0_2, %c0_3] : memref<32x32xf32, #tpu.memory_space<vmem>>, vector<32x32xf32>
    %cst = arith.constant dense<0.000000e+00> : vector<8x32xf32>
    %3 = tpu.matmul %1, %2, %cst {dimension_numbers = #tpu.dot_dimension_numbers<[1], [0], [0], [1], [0, 0, 1, 1], [], []>} : vector<8x32xf32>, vector<32x32xf32>, vector<8x32xf32> -> vector<8x32xf32>
    %c0_4 = arith.constant 0 : index
    %c0_5 = arith.constant 0 : index
    %4 = vector.load %arg3[%c0_4, %c0_5] : memref<1x32xf32, #tpu.memory_space<vmem>>, vector<1x32xf32>
    %5 = vector.broadcast %4 : vector<1x32xf32> to vector<8x32xf32>
    %6 = arith.addf %3, %5 : vector<8x32xf32>
    %cst_6 = arith.constant 5.000000e-01 : f32
    %7 = vector.broadcast %cst_6 : f32 to vector<8x32xf32>
    %8 = arith.mulf %7, %6 : vector<8x32xf32>
    %cst_7 = arith.constant 0.707106769 : f32
    %9 = vector.broadcast %cst_7 : f32 to vector<8x32xf32>
    %10 = arith.mulf %6, %9 : vector<8x32xf32>
    %11 = math.absf %10 : vector<8x32xf32>
    %cst_8 = arith.constant 0.327591091 : f32
    %12 = vector.broadcast %cst_8 : f32 to vector<8x32xf32>
    %13 = arith.mulf %12, %11 : vector<8x32xf32>
    %cst_9 = arith.constant 1.000000e+00 : f32
    %14 = vector.broadcast %cst_9 : f32 to vector<8x32xf32>
    %15 = arith.addf %14, %13 : vector<8x32xf32>
    %cst_10 = arith.constant 1.000000e+00 : f32
    %16 = vector.broadcast %cst_10 : f32 to vector<8x32xf32>
    %17 = arith.divf %16, %15 : vector<8x32xf32>
    %cst_11 = arith.constant 1.06140542 : f32
    %18 = vector.broadcast %cst_11 : f32 to vector<8x32xf32>
    %19 = arith.mulf %18, %17 : vector<8x32xf32>
    %cst_12 = arith.constant -1.45315206 : f32
    %20 = vector.broadcast %cst_12 : f32 to vector<8x32xf32>
    %21 = arith.addf %19, %20 : vector<8x32xf32>
    %22 = arith.mulf %21, %17 : vector<8x32xf32>
    %cst_13 = arith.constant 1.42141378 : f32
    %23 = vector.broadcast %cst_13 : f32 to vector<8x32xf32>
    %24 = arith.addf %22, %23 : vector<8x32xf32>
    %25 = arith.mulf %24, %17 : vector<8x32xf32>
    %cst_14 = arith.constant -0.284496725 : f32
    %26 = vector.broadcast %cst_14 : f32 to vector<8x32xf32>
    %27 = arith.addf %25, %26 : vector<8x32xf32>
    %28 = arith.mulf %27, %17 : vector<8x32xf32>
    %cst_15 = arith.constant 0.254829586 : f32
    %29 = vector.broadcast %cst_15 : f32 to vector<8x32xf32>
    %30 = arith.addf %28, %29 : vector<8x32xf32>
    %31 = arith.mulf %30, %17 : vector<8x32xf32>
    %32 = arith.mulf %11, %11 : vector<8x32xf32>
    %cst_16 = arith.constant 0.000000e+00 : f32
    %33 = vector.broadcast %cst_16 : f32 to vector<8x32xf32>
    %34 = arith.subf %33, %32 : vector<8x32xf32>
    %35 = math.exp %34 : vector<8x32xf32>
    %36 = arith.mulf %31, %35 : vector<8x32xf32>
    %cst_17 = arith.constant 1.000000e+00 : f32
    %37 = vector.broadcast %cst_17 : f32 to vector<8x32xf32>
    %38 = arith.subf %37, %36 : vector<8x32xf32>
    %cst_18 = arith.constant 0.000000e+00 : f32
    %39 = vector.broadcast %cst_18 : f32 to vector<8x32xf32>
    %40 = arith.cmpf olt, %10, %39 : vector<8x32xf32>
    %cst_19 = arith.constant 0.000000e+00 : f32
    %41 = vector.broadcast %cst_19 : f32 to vector<8x32xf32>
    %42 = arith.subf %41, %38 : vector<8x32xf32>
    %43 = arith.select %40, %42, %38 : vector<8x32xi1>, vector<8x32xf32>
    %cst_20 = arith.constant 1.000000e+00 : f32
    %44 = vector.broadcast %cst_20 : f32 to vector<8x32xf32>
    %45 = arith.addf %44, %43 : vector<8x32xf32>
    %46 = arith.mulf %8, %45 : vector<8x32xf32>
    %cst_21 = arith.constant dense<0.000000e+00> : vector<8xf32>
    %47 = vector.multi_reduction <add>, %46, %cst_21 [1] : vector<8x32xf32> to vector<8xf32>
    %48 = vector.shape_cast %47 : vector<8xf32> to vector<8x1xf32>
    %cst_22 = arith.constant 3.125000e-02 : f32
    %49 = vector.broadcast %cst_22 : f32 to vector<8x1xf32>
    %50 = arith.mulf %48, %49 : vector<8x1xf32>
    %51 = vector.broadcast %50 : vector<8x1xf32> to vector<8x32xf32>
    %52 = arith.subf %46, %51 : vector<8x32xf32>
    %53 = arith.mulf %52, %52 : vector<8x32xf32>
    %cst_23 = arith.constant dense<0.000000e+00> : vector<8xf32>
    %54 = vector.multi_reduction <add>, %53, %cst_23 [1] : vector<8x32xf32> to vector<8xf32>
    %55 = vector.shape_cast %54 : vector<8xf32> to vector<8x1xf32>
    %cst_24 = arith.constant 3.125000e-02 : f32
    %56 = vector.broadcast %cst_24 : f32 to vector<8x1xf32>
    %57 = arith.mulf %55, %56 : vector<8x1xf32>
    %cst_25 = arith.constant 9.99999974E-6 : f32
    %58 = vector.broadcast %cst_25 : f32 to vector<8x1xf32>
    %59 = arith.addf %57, %58 : vector<8x1xf32>
    %60 = math.rsqrt %59 : vector<8x1xf32>
    %61 = vector.broadcast %60 : vector<8x1xf32> to vector<8x32xf32>
    %62 = arith.mulf %52, %61 : vector<8x32xf32>
    %c0_26 = arith.constant 0 : index
    %c0_27 = arith.constant 0 : index
    %63 = vector.load %arg4[%c0_26, %c0_27] : memref<1x32xf32, #tpu.memory_space<vmem>>, vector<1x32xf32>
    %64 = vector.broadcast %63 : vector<1x32xf32> to vector<8x32xf32>
    %65 = arith.mulf %62, %64 : vector<8x32xf32>
    %c0_28 = arith.constant 0 : index
    %c0_29 = arith.constant 0 : index
    %66 = vector.load %arg5[%c0_28, %c0_29] : memref<1x32xf32, #tpu.memory_space<vmem>>, vector<1x32xf32>
    %67 = vector.broadcast %66 : vector<1x32xf32> to vector<8x32xf32>
    %68 = arith.addf %65, %67 : vector<8x32xf32>
    %c0_30 = arith.constant 0 : index
    %c0_31 = arith.constant 0 : index
    %69 = vector.load %arg6[%c0_30, %c0_31] : memref<32x32xf32, #tpu.memory_space<vmem>>, vector<32x32xf32>
    %cst_32 = arith.constant dense<0.000000e+00> : vector<8x32xf32>
    %70 = tpu.matmul %68, %69, %cst_32 {dimension_numbers = #tpu.dot_dimension_numbers<[1], [0], [0], [1], [0, 0, 1, 1], [], []>} : vector<8x32xf32>, vector<32x32xf32>, vector<8x32xf32> -> vector<8x32xf32>
    %c0_33 = arith.constant 0 : index
    %c0_34 = arith.constant 0 : index
    %71 = vector.load %arg7[%c0_33, %c0_34] : memref<1x32xf32, #tpu.memory_space<vmem>>, vector<1x32xf32>
    %72 = vector.broadcast %71 : vector<1x32xf32> to vector<8x32xf32>
    %73 = arith.addf %70, %72 : vector<8x32xf32>
    %74 = vector.extract_strided_slice %73 {offsets = [0, 0], sizes = [8, 16], strides = [1, 1]} : vector<8x32xf32> to vector<8x16xf32>
    %75 = vector.extract_strided_slice %73 {offsets = [0, 16], sizes = [8, 16], strides = [1, 1]} : vector<8x32xf32> to vector<8x16xf32>
    %cst_35 = arith.constant dense<0.000000e+00> : vector<16xf32>
    %76 = vector.multi_reduction <add>, %75, %cst_35 [0] : vector<8x16xf32> to vector<16xf32>
    %77 = vector.shape_cast %76 : vector<16xf32> to vector<1x16xf32>
    %cst_36 = arith.constant 1.250000e-01 : f32
    %78 = vector.broadcast %cst_36 : f32 to vector<1x16xf32>
    %79 = arith.mulf %77, %78 : vector<1x16xf32>
    %c0_37 = arith.constant 0 : index
    %c0_38 = arith.constant 0 : index
    %80 = vector.load %arg8[%c0_37, %c0_38] : memref<32x16xf32, #tpu.memory_space<vmem>>, vector<16x16xf32>
    %cst_39 = arith.constant dense<0.000000e+00> : vector<8x16xf32>
    %81 = tpu.matmul %74, %80, %cst_39 {dimension_numbers = #tpu.dot_dimension_numbers<[1], [0], [0], [1], [0, 0, 1, 1], [], []>} : vector<8x16xf32>, vector<16x16xf32>, vector<8x16xf32> -> vector<8x16xf32>
    %c16 = arith.constant 16 : index
    %c0_40 = arith.constant 0 : index
    %82 = vector.load %arg8[%c16, %c0_40] : memref<32x16xf32, #tpu.memory_space<vmem>>, vector<16x16xf32>
    %cst_41 = arith.constant dense<0.000000e+00> : vector<1x16xf32>
    %83 = tpu.matmul %79, %82, %cst_41 {dimension_numbers = #tpu.dot_dimension_numbers<[1], [0], [0], [1], [0, 0, 1, 1], [], []>} : vector<1x16xf32>, vector<16x16xf32>, vector<1x16xf32> -> vector<1x16xf32>
    %84 = vector.broadcast %83 : vector<1x16xf32> to vector<8x16xf32>
    %85 = arith.addf %81, %84 : vector<8x16xf32>
    %c0_42 = arith.constant 0 : index
    %c0_43 = arith.constant 0 : index
    %86 = vector.load %arg9[%c0_42, %c0_43] : memref<1x16xf32, #tpu.memory_space<vmem>>, vector<1x16xf32>
    %87 = vector.broadcast %86 : vector<1x16xf32> to vector<8x16xf32>
    %88 = arith.addf %85, %87 : vector<8x16xf32>
    %cst_44 = arith.constant 5.000000e-01 : f32
    %89 = vector.broadcast %cst_44 : f32 to vector<8x16xf32>
    %90 = arith.mulf %89, %88 : vector<8x16xf32>
    %cst_45 = arith.constant 0.707106769 : f32
    %91 = vector.broadcast %cst_45 : f32 to vector<8x16xf32>
    %92 = arith.mulf %88, %91 : vector<8x16xf32>
    %93 = math.absf %92 : vector<8x16xf32>
    %cst_46 = arith.constant 0.327591091 : f32
    %94 = vector.broadcast %cst_46 : f32 to vector<8x16xf32>
    %95 = arith.mulf %94, %93 : vector<8x16xf32>
    %cst_47 = arith.constant 1.000000e+00 : f32
    %96 = vector.broadcast %cst_47 : f32 to vector<8x16xf32>
    %97 = arith.addf %96, %95 : vector<8x16xf32>
    %cst_48 = arith.constant 1.000000e+00 : f32
    %98 = vector.broadcast %cst_48 : f32 to vector<8x16xf32>
    %99 = arith.divf %98, %97 : vector<8x16xf32>
    %cst_49 = arith.constant 1.06140542 : f32
    %100 = vector.broadcast %cst_49 : f32 to vector<8x16xf32>
    %101 = arith.mulf %100, %99 : vector<8x16xf32>
    %cst_50 = arith.constant -1.45315206 : f32
    %102 = vector.broadcast %cst_50 : f32 to vector<8x16xf32>
    %103 = arith.addf %101, %102 : vector<8x16xf32>
    %104 = arith.mulf %103, %99 : vector<8x16xf32>
    %cst_51 = arith.constant 1.42141378 : f32
    %105 = vector.broadcast %cst_51 : f32 to vector<8x16xf32>
    %106 = arith.addf %104, %105 : vector<8x16xf32>
    %107 = arith.mulf %106, %99 : vector<8x16xf32>
    %cst_52 = arith.constant -0.284496725 : f32
    %108 = vector.broadcast %cst_52 : f32 to vector<8x16xf32>
    %109 = arith.addf %107, %108 : vector<8x16xf32>
    %110 = arith.mulf %109, %99 : vector<8x16xf32>
    %cst_53 = arith.constant 0.254829586 : f32
    %111 = vector.broadcast %cst_53 : f32 to vector<8x16xf32>
    %112 = arith.addf %110, %111 : vector<8x16xf32>
    %113 = arith.mulf %112, %99 : vector<8x16xf32>
    %114 = arith.mulf %93, %93 : vector<8x16xf32>
    %cst_54 = arith.constant 0.000000e+00 : f32
    %115 = vector.broadcast %cst_54 : f32 to vector<8x16xf32>
    %116 = arith.subf %115, %114 : vector<8x16xf32>
    %117 = math.exp %116 : vector<8x16xf32>
    %118 = arith.mulf %113, %117 : vector<8x16xf32>
    %cst_55 = arith.constant 1.000000e+00 : f32
    %119 = vector.broadcast %cst_55 : f32 to vector<8x16xf32>
    %120 = arith.subf %119, %118 : vector<8x16xf32>
    %cst_56 = arith.constant 0.000000e+00 : f32
    %121 = vector.broadcast %cst_56 : f32 to vector<8x16xf32>
    %122 = arith.cmpf olt, %92, %121 : vector<8x16xf32>
    %cst_57 = arith.constant 0.000000e+00 : f32
    %123 = vector.broadcast %cst_57 : f32 to vector<8x16xf32>
    %124 = arith.subf %123, %120 : vector<8x16xf32>
    %125 = arith.select %122, %124, %120 : vector<8x16xi1>, vector<8x16xf32>
    %cst_58 = arith.constant 1.000000e+00 : f32
    %126 = vector.broadcast %cst_58 : f32 to vector<8x16xf32>
    %127 = arith.addf %126, %125 : vector<8x16xf32>
    %128 = arith.mulf %90, %127 : vector<8x16xf32>
    %c0_59 = arith.constant 0 : index
    %c0_60 = arith.constant 0 : index
    %129 = vector.load %arg10[%c0_59, %c0_60] : memref<16x8xf32, #tpu.memory_space<vmem>>, vector<16x8xf32>
    %cst_61 = arith.constant dense<0.000000e+00> : vector<8x8xf32>
    %130 = tpu.matmul %128, %129, %cst_61 {dimension_numbers = #tpu.dot_dimension_numbers<[1], [0], [0], [1], [0, 0, 1, 1], [], []>} : vector<8x16xf32>, vector<16x8xf32>, vector<8x8xf32> -> vector<8x8xf32>
    %c0_62 = arith.constant 0 : index
    %c0_63 = arith.constant 0 : index
    %131 = vector.load %arg11[%c0_62, %c0_63] : memref<1x8xf32, #tpu.memory_space<vmem>>, vector<1x8xf32>
    %132 = vector.broadcast %131 : vector<1x8xf32> to vector<8x8xf32>
    %133 = arith.addf %130, %132 : vector<8x8xf32>
    %cst_64 = arith.constant 5.000000e-01 : f32
    %134 = vector.broadcast %cst_64 : f32 to vector<8x8xf32>
    %135 = arith.mulf %134, %133 : vector<8x8xf32>
    %cst_65 = arith.constant 0.707106769 : f32
    %136 = vector.broadcast %cst_65 : f32 to vector<8x8xf32>
    %137 = arith.mulf %133, %136 : vector<8x8xf32>
    %138 = math.absf %137 : vector<8x8xf32>
    %cst_66 = arith.constant 0.327591091 : f32
    %139 = vector.broadcast %cst_66 : f32 to vector<8x8xf32>
    %140 = arith.mulf %139, %138 : vector<8x8xf32>
    %cst_67 = arith.constant 1.000000e+00 : f32
    %141 = vector.broadcast %cst_67 : f32 to vector<8x8xf32>
    %142 = arith.addf %141, %140 : vector<8x8xf32>
    %cst_68 = arith.constant 1.000000e+00 : f32
    %143 = vector.broadcast %cst_68 : f32 to vector<8x8xf32>
    %144 = arith.divf %143, %142 : vector<8x8xf32>
    %cst_69 = arith.constant 1.06140542 : f32
    %145 = vector.broadcast %cst_69 : f32 to vector<8x8xf32>
    %146 = arith.mulf %145, %144 : vector<8x8xf32>
    %cst_70 = arith.constant -1.45315206 : f32
    %147 = vector.broadcast %cst_70 : f32 to vector<8x8xf32>
    %148 = arith.addf %146, %147 : vector<8x8xf32>
    %149 = arith.mulf %148, %144 : vector<8x8xf32>
    %cst_71 = arith.constant 1.42141378 : f32
    %150 = vector.broadcast %cst_71 : f32 to vector<8x8xf32>
    %151 = arith.addf %149, %150 : vector<8x8xf32>
    %152 = arith.mulf %151, %144 : vector<8x8xf32>
    %cst_72 = arith.constant -0.284496725 : f32
    %153 = vector.broadcast %cst_72 : f32 to vector<8x8xf32>
    %154 = arith.addf %152, %153 : vector<8x8xf32>
    %155 = arith.mulf %154, %144 : vector<8x8xf32>
    %cst_73 = arith.constant 0.254829586 : f32
    %156 = vector.broadcast %cst_73 : f32 to vector<8x8xf32>
    %157 = arith.addf %155, %156 : vector<8x8xf32>
    %158 = arith.mulf %157, %144 : vector<8x8xf32>
    %159 = arith.mulf %138, %138 : vector<8x8xf32>
    %cst_74 = arith.constant 0.000000e+00 : f32
    %160 = vector.broadcast %cst_74 : f32 to vector<8x8xf32>
    %161 = arith.subf %160, %159 : vector<8x8xf32>
    %162 = math.exp %161 : vector<8x8xf32>
    %163 = arith.mulf %158, %162 : vector<8x8xf32>
    %cst_75 = arith.constant 1.000000e+00 : f32
    %164 = vector.broadcast %cst_75 : f32 to vector<8x8xf32>
    %165 = arith.subf %164, %163 : vector<8x8xf32>
    %cst_76 = arith.constant 0.000000e+00 : f32
    %166 = vector.broadcast %cst_76 : f32 to vector<8x8xf32>
    %167 = arith.cmpf olt, %137, %166 : vector<8x8xf32>
    %cst_77 = arith.constant 0.000000e+00 : f32
    %168 = vector.broadcast %cst_77 : f32 to vector<8x8xf32>
    %169 = arith.subf %168, %165 : vector<8x8xf32>
    %170 = arith.select %167, %169, %165 : vector<8x8xi1>, vector<8x8xf32>
    %cst_78 = arith.constant 1.000000e+00 : f32
    %171 = vector.broadcast %cst_78 : f32 to vector<8x8xf32>
    %172 = arith.addf %171, %170 : vector<8x8xf32>
    %173 = arith.mulf %135, %172 : vector<8x8xf32>
    %c0_79 = arith.constant 0 : index
    %c0_80 = arith.constant 0 : index
    %174 = vector.load %arg12[%c0_79, %c0_80] : memref<8x2xf32, #tpu.memory_space<vmem>>, vector<8x2xf32>
    %cst_81 = arith.constant dense<0.000000e+00> : vector<8x2xf32>
    %175 = tpu.matmul %173, %174, %cst_81 {dimension_numbers = #tpu.dot_dimension_numbers<[1], [0], [0], [1], [0, 0, 1, 1], [], []>} : vector<8x8xf32>, vector<8x2xf32>, vector<8x2xf32> -> vector<8x2xf32>
    %c0_82 = arith.constant 0 : index
    %c0_83 = arith.constant 0 : index
    %176 = vector.load %arg13[%c0_82, %c0_83] : memref<1x2xf32, #tpu.memory_space<vmem>>, vector<1x2xf32>
    %177 = vector.broadcast %176 : vector<1x2xf32> to vector<8x2xf32>
    %178 = arith.addf %175, %177 : vector<8x2xf32>
    %c0_84 = arith.constant 0 : index
    %c0_85 = arith.constant 0 : index
    %c0_86 = arith.constant 0 : index
    %179 = vector.load %arg14[%c0_84, %c0_85, %c0_86] : memref<1x8x2xf32, #tpu.memory_space<vmem>>, vector<1x8x2xf32>
    %180 = vector.shape_cast %179 : vector<1x8x2xf32> to vector<8x2xf32>
    %181 = vector.shape_cast %178 : vector<8x2xf32> to vector<1x8x2xf32>
    tpu.vector_store %arg14[%c0_84, %c0_85, %c0_86], %181 {strides = array<i32>} : memref<1x8x2xf32, #tpu.memory_space<vmem>>, vector<1x8x2xf32>,
    return
  }
  func.func @transform_0(%arg0: i32) -> (i32, i32, i32) {
    %c0_i32 = arith.constant 0 : i32
    %c0_i32_0 = arith.constant 0 : i32
    %c0_i32_1 = arith.constant 0 : i32
    return %arg0, %c0_i32, %c0_i32_0 : i32, i32, i32
  }
  func.func @transform_1(%arg0: i32) -> (i32, i32) {
    %c0_i32 = arith.constant 0 : i32
    %c0_i32_0 = arith.constant 0 : i32
    %c0_i32_1 = arith.constant 0 : i32
    return %c0_i32, %c0_i32_0 : i32, i32
  }
  func.func @transform_2(%arg0: i32) -> (i32, i32) {
    %c0_i32 = arith.constant 0 : i32
    %c0_i32_0 = arith.constant 0 : i32
    %c0_i32_1 = arith.constant 0 : i32
    return %c0_i32, %c0_i32_0 : i32, i32
  }
  func.func @transform_3(%arg0: i32) -> (i32, i32) {
    %c0_i32 = arith.constant 0 : i32
    %c0_i32_0 = arith.constant 0 : i32
    %c0_i32_1 = arith.constant 0 : i32
    return %c0_i32, %c0_i32_0 : i32, i32
  }
  func.func @transform_4(%arg0: i32) -> (i32, i32) {
    %c0_i32 = arith.constant 0 : i32
    %c0_i32_0 = arith.constant 0 : i32
    %c0_i32_1 = arith.constant 0 : i32
    return %c0_i32, %c0_i32_0 : i32, i32
  }
  func.func @transform_5(%arg0: i32) -> (i32, i32) {
    %c0_i32 = arith.constant 0 : i32
    %c0_i32_0 = arith.constant 0 : i32
    %c0_i32_1 = arith.constant 0 : i32
    return %c0_i32, %c0_i32_0 : i32, i32
  }
  func.func @transform_6(%arg0: i32) -> (i32, i32) {
    %c0_i32 = arith.constant 0 : i32
    %c0_i32_0 = arith.constant 0 : i32
    %c0_i32_1 = arith.constant 0 : i32
    return %c0_i32, %c0_i32_0 : i32, i32
  }
  func.func @transform_7(%arg0: i32) -> (i32, i32) {
    %c0_i32 = arith.constant 0 : i32
    %c0_i32_0 = arith.constant 0 : i32
    %c0_i32_1 = arith.constant 0 : i32
    return %c0_i32, %c0_i32_0 : i32, i32
  }
  func.func @transform_8(%arg0: i32) -> (i32, i32) {
    %c0_i32 = arith.constant 0 : i32
    %c0_i32_0 = arith.constant 0 : i32
    %c0_i32_1 = arith.constant 0 : i32
    return %c0_i32, %c0_i32_0 : i32, i32
  }
  func.func @transform_9(%arg0: i32) -> (i32, i32) {
    %c0_i32 = arith.constant 0 : i32
    %c0_i32_0 = arith.constant 0 : i32
    %c0_i32_1 = arith.constant 0 : i32
    return %c0_i32, %c0_i32_0 : i32, i32
  }
  func.func @transform_10(%arg0: i32) -> (i32, i32) {
    %c0_i32 = arith.constant 0 : i32
    %c0_i32_0 = arith.constant 0 : i32
    %c0_i32_1 = arith.constant 0 : i32
    return %c0_i32, %c0_i32_0 : i32, i32
  }
  func.func @transform_11(%arg0: i32) -> (i32, i32) {
    %c0_i32 = arith.constant 0 : i32
    %c0_i32_0 = arith.constant 0 : i32
    %c0_i32_1 = arith.constant 0 : i32
    return %c0_i32, %c0_i32_0 : i32, i32
  }
  func.func @transform_12(%arg0: i32) -> (i32, i32) {
    %c0_i32 = arith.constant 0 : i32
    %c0_i32_0 = arith.constant 0 : i32
    %c0_i32_1 = arith.constant 0 : i32
    return %c0_i32, %c0_i32_0 : i32, i32
  }
  func.func @transform_13(%arg0: i32) -> (i32, i32, i32) {
    %c0_i32 = arith.constant 0 : i32
    %c0_i32_0 = arith.constant 0 : i32
    %c0_i32_1 = arith.constant 0 : i32
    return %arg0, %c0_i32, %c0_i32_0 : i32, i32, i32
  }
}

</mosaic_0001>

<bundles_post_ra>
// kernel: tpu_custom_call.1
= control target key start
LH: loop header
LB: loop body
LE: loop exit
PB: predicated region body
PF: predicated region fallthrough
CT: control target
= control target key end

     0   :  { %18 = vsyncpa [#allocation3], 0  ;;  %s1038_s25 = smov 0   ;;  %s1126_s0 = inlined_call_operand.vmem [shape: f32[2,8,32], index: 0, kind: input, shape index: {}]   ;;  %s1127_s1 = inlined_call_operand.vmem [shape: f32[32,32], index: 1, kind: input, shape index: {}]   ;;  %s1128_s2 = inlined_call_operand.vmem [shape: f32[1,32], index: 2, kind: input, shape index: {}]   ;;  %s1129_s3 = inlined_call_operand.vmem [shape: f32[1,32], index: 3, kind: input, shape index: {}]   ;;  %s1130_s4 = inlined_call_operand.vmem [shape: f32[1,32], index: 4, kind: input, shape index: {}]   ;;  %s1131_s5 = inlined_call_operand.hbm [shape: f32[32,32], index: 5, kind: input, shape index: {}]   ;;  %s1132_s6 = inlined_call_operand.vmem [shape: f32[1,32], index: 6, kind: input, shape index: {}]   ;;  %s1133_s7 = inlined_call_operand.vmem [shape: f32[32,16], index: 7, kind: input, shape index: {}]   ;;  %s1134_s8 = inlined_call_operand.vmem [shape: f32[1,16], index: 8, kind: input, shape index: {}]   ;;  %s1135_s9 = inlined_call_operand.vmem [shape: f32[16,8], index: 9, kind: input, shape index: {}]   ;;  %s1136_s10 = inlined_call_operand.vmem [shape: f32[1,8], index: 10, kind: input, shape index: {}]   ;;  %s1137_s11 = inlined_call_operand.vmem [shape: f32[8,2], index: 11, kind: input, shape index: {}]   ;;  %s1138_s12 = inlined_call_operand.vmem [shape: f32[1,2], index: 12, kind: input, shape index: {}]   ;;  %s1139_s13 = inlined_call_operand.vmem [shape: f32[2,8,2], index: 13, kind: output, shape index: {}]  }
   0x1 LB: > { %s356_s28 = sshll.u32 %s1131_s5, 4  ;;  %s862_s29 = sadd.s32 4294967295, %s962_s25   ;;  %s962_s25 = sphi %s1038_s25, %s24_s25   ;;  %s357_s28 = int_to_ptr.hbm [resolvable:$true] %s356_s28 }
   0x2   : > { %p864_p0 = scmp.ge.s32.totalorder %s962_s25, 1  ;;  %p333_p1 = scmp.lt.s32.totalorder %s962_s25, 3 }
   0x3   : > { %p887_p2 = scmp.eq.s32.totalorder %s862_s29, 0  ;;  %s964_s30 = smov [#allocation2]  }
   0x4   : > { %p334_p3 = pnand %p864_p0, %p333_p1  ;;  %s358_s14 = sshll.u32 %s964_s30, 4  ;;  %s359_s14 = int_to_ptr.vmem [resolvable:$true] %s358_s14 }
   0x5   : > { %s965_s15 = smov 128   ;;  %s966_s16 = smov 8  }
   0x6   : > { %p883_p4 = pneg %p334_p3  ;;  %402 = sbr.rel (%p334_p3) target bundleno = 1243 (0x4db), region = 72 }
   0x8   : > { %p884_p5 = pnand %p887_p2, %p883_p4 }
   0xa   : > { %886 = dma.hbm_to_vmem [thread:$0]  (!%p884_p5), %s357_s28, 512, %s359_s14, [#allocation3], %s965_s15, %s965_s15, %s966_s16  }
   0xb   : > { %957 = dma.done.wait (%p887_p2), [#allocation3], 512  }
   0xc   : > { %959 = vsyncadd (%p887_p2), [#allocation3], 4294966784  ;;  %p445_p6 = scmp.lt.s32.totalorder %s862_s29, 1  ;;  %v457_v0 = vld [vmem:[%s1127_s1 + $0x18] sm:$0xff]  ;;  %v456_v1 = vld [vmem:[%s1127_s1 + $0x10] sm:$0xff]  ;;  %vm462_vm0 = vcmask 261120  }
   0xd   : > { %478 = vmatpush.msra.mxu0 %v457_v0  ;;  %v455_v2 = vld [vmem:[%s1127_s1 + $0x8] sm:$0xff]  ;;  %v454_v3 = vld [vmem:[%s1127_s1] sm:$0xff]  ;;  %v561_v48 = vld [vmem:[#allocation2 + $0x18] sm:$0xff]  ;;  %vm589_vm9 = vcmask 261248   ;;  %vm605_vm10 = vcmask 130048   ;;  %s967_s16 = smov 112  }
   0xe   : > { %s1141_s29 = smov (!%p445_p6, %s862_s29), 1  ;;  %v901_v5 = vld [vmem:[%s1128_s2] ss:$0 sm:$0xff]  ;;  %v560_v49 = vld [vmem:[#allocation2 + $0x10] sm:$0xff]  ;;  %581 = vmatpush.msra.mxu1 %v561_v48  ;;  %v559_v50 = vld [vmem:[#allocation2 + $0x8] sm:$0xff] }
   0xf   : > { %s869_s17 = sshll.u32 %s1141_s29, 3  ;;  %479 = vmatpush.msra.mxu0 %v456_v1  ;;  %v558_v51 = vld [vmem:[#allocation2] sm:$0xff] }
  0x10   : > { %s448_s27 = scalar_lea.vmem %s1126_s0, %s869_s17  ;;  %582 = vmatpush.msra.mxu1 %v560_v49  ;;  %v902_v61 = vld [vmem:[%s1129_s3] ss:$0 sm:$0xff]  ;;  %s452_s18 = scalar_lea.vmem %s1139_s13, %s869_s17 }
  0x11   : > { %480 = vmatpush.msra.mxu0 %v455_v2  ;;  %v453_v4 = vld [vmem:[%s448_s27] sm:$0xff] }
  0x12   : > { %583 = vmatpush.msra.mxu1 %v559_v50  ;;  %v903_v0 = vld [vmem:[%s1130_s4] ss:$0 sm:$0xff] }
  0x13   : > { %481 = vmatpush.msra.mxu0 %v454_v3  ;;  %v599_v3 = vld [vmem:[%s1133_s7 + $0x8] sm:$0xff] }
  0x14   : > { %871 = vmatmul.msk.f32.vlgmr.msra.gmra.mxu0 %vm462_vm0, %v453_v4  ;;  %584 = vmatpush.msra.mxu1 %v558_v51  ;;  %v598_v4 = vld [vmem:[%s1133_s7] sm:$0xff] }
  0x15   : > { %646 = vmatpush.msra.mxu3 %v599_v3 }
  0x17   : > { %647 = vmatpush.msra.mxu3 %v598_v4 }
  0x91   : > { %v483_v6 = vpop.f32.mrf.mxu0 }
  0x92   : > { %v484_v7 = vadd.f32 %v901_v5, %v483_v6  ;;  %v601_v5 = vld [vmem:[%s1133_s7 + $0x18] sm:$0xff]  ;;  %v600_v6 = vld [vmem:[%s1133_s7 + $0x10] sm:$0xff] }
  0x93   : > { %622 = vmatpush.msra.mxu2 %v601_v5 }
  0x94   : > { %v487_v8 = vmul.f32 0.70710677, %v484_v7  ;;  %v486_v39 = vmul.f32 0.5, %v484_v7  ;;  %v904_v7 = vld [vmem:[%s1132_s6] ss:$0 sm:$0xff] }
  0x95   : > { %623 = vmatpush.msra.mxu2 %v600_v6 }
  0x96   : > { %v488_v9 = vand.u32 2147483647, %v487_v8  ;;  %vm521_vm5 = vcmp.lt.f32.partialorder %v487_v8, 0.0 }
  0x98   : > { %v489_v10 = vmul.f32 0.3275911, %v488_v9  ;;  %v515_v21 = vmul.f32 %v488_v9, %v488_v9 }
  0x9a   : > { %v490_v11 = vadd.f32 1.0, %v489_v10  ;;  %v516_v25 = vsub.f32 0.0, %v515_v21 }
  0x9c   : > { %908 = vrcp.f32 %v490_v11  ;;  %v502_v15 = vand.u32 2147483648, %v490_v11  ;;  %v500_v17 = vand.u32 2147483647, %v490_v11  ;;  %vm496_vm2 = vweird.f32 %v490_v11 }
  0x9d   : > { %v517_v28 = vmul.f32 1.442695, %v516_v25 }
  0x9e   : > { %v503_v19 = vor.u32 1.1754944e-38, %v502_v15  ;;  %vm501_vm4 = vcmp.eq.f32.partialorder %v500_v17, 8.507059e+37 }
  0x9f   : > { %910 = vpow2.f32 %v517_v28 }
  0xa2   : > { %v909_v12 = vpop.eup %908 }
  0xa3   : > { %v492_v13 = vmul.f32 %v909_v12, %v490_v11  ;;  %vm497_vm1 = vweird.f32 %v909_v12 }
  0xa4   : > { %vm498_vm3 = vmor %vm496_vm2, %vm497_vm1 }
  0xa5   : > { %v493_v14 = vsub.f32 1.0, %v492_v13  ;;  %v911_v34 = vpop.eup %910 }
  0xa7   : > { %v494_v16 = vmul.f32 %v909_v12, %v493_v14 }
  0xa9   : > { %v495_v18 = vadd.f32 %v909_v12, %v494_v16 }
  0xab   : > { %v499_v20 = vsel %vm498_vm3, %v909_v12, %v495_v18 }
  0xac   : > { %v504_v22 = vsel %vm501_vm4, %v503_v19, %v499_v20  ;;  %v698_v19 = vld [vmem:[%s1135_s9 + $0x8] sm:$0xff]  ;;  %v697_v20 = vld [vmem:[%s1135_s9] sm:$0xff] }
  0xad   : > { %v506_v23 = vmul.f32 1.0614054, %v504_v22  ;;  %720 = vmatpush.msrb.mxu2 %v698_v19 }
  0xaf   : > { %v507_v24 = vadd.f32 -1.4531521, %v506_v23  ;;  %721 = vmatpush.msrb.mxu2 %v697_v20  ;;  %v905_v23 = vld [vmem:[%s1134_s8] ss:$0 sm:$0xff] }
  0xb1   : > { %v508_v26 = vmul.f32 %v507_v24, %v504_v22 }
  0xb3   : > { %v509_v27 = vadd.f32 1.4214138, %v508_v26 }
  0xb5   : > { %v510_v29 = vmul.f32 %v509_v27, %v504_v22 }
  0xb7   : > { %v511_v30 = vadd.f32 -0.28449672, %v510_v29 }
  0xb9   : > { %v512_v31 = vmul.f32 %v511_v30, %v504_v22 }
  0xbb   : > { %v513_v32 = vadd.f32 0.2548296, %v512_v31 }
  0xbd   : > { %v514_v33 = vmul.f32 %v513_v32, %v504_v22 }
  0xbf   : > { %v519_v35 = vmul.f32 %v911_v34, %v514_v33 }
  0xc1   : > { %v520_v36 = vsub.f32 1.0, %v519_v35 }
  0xc3   : > { %v522_v37 = vsub.f32 0.0, %v520_v36 }
  0xc5   : > { %v523_v38 = vsel %vm521_vm5, %v522_v37, %v520_v36  ;;  %vm771_vm5 = vcmask 64512  }
  0xc6   : > { %v524_v40 = vadd.f32 1.0, %v523_v38 }
  0xc8   : > { %v525_v41 = vmul.f32 %v524_v40, %v486_v39 }
  0xca   : > { %v526_v42 = vsel %vm462_vm0, %v525_v41, 0.0 }
  0xcb   : > { %527 = vadd.xlane.f32.xlu0 %v526_v42 }
 0x13e   : > { %v528_v43 = vpop.xlane.xlu0 %527 }
 0x13f   : > { %v529_v44 = vmul.f32 0.03125, %v528_v43 }
 0x141   : > { %v530_v45 = vsub.f32 %v525_v41, %v529_v44 }
 0x143   : > { %v531_v46 = vmul.f32 %v530_v45, %v530_v45 }
 0x145   : > { %v532_v47 = vsel %vm462_vm0, %v531_v46, 0.0 }
 0x146   : > { %533 = vadd.xlane.f32.xlu0 %v532_v47 }
 0x1b9   : > { %v534_v52 = vpop.xlane.xlu0 %533 }
 0x1ba   : > { %v535_v53 = vmul.f32 0.03125, %v534_v52 }
 0x1bc   : > { %v536_v54 = vadd.f32 1e-05, %v535_v53 }
 0x1be   : > { %912 = vrsqrt.f32 %v536_v54  ;;  %vm543_vm7 = vweird.f32 %v536_v54 }
 0x1c4   : > { %v913_v55 = vpop.eup %912 }
 0x1c5   : > { %v538_v56 = vmul.f32 %v913_v55, %v536_v54  ;;  %vm544_vm6 = vweird.f32 %v913_v55 }
 0x1c6   : > { %vm545_vm8 = vmor %vm543_vm7, %vm544_vm6  ;;  %vm795_vm6 = vcmask 15360  }
 0x1c7   : > { %v539_v57 = vmul.f32 %v913_v55, %v538_v56 }
 0x1c9   : > { %v540_v58 = vmul.f32 0.5, %v539_v57 }
 0x1cb   : > { %v541_v59 = vsub.f32 1.5, %v540_v58 }
 0x1cd   : > { %v542_v60 = vmul.f32 %v913_v55, %v541_v59 }
 0x1cf   : > { %v546_v62 = vsel %vm545_vm8, %v913_v55, %v542_v60 }
 0x1d0   : > { %v547_v63 = vmul.f32 %v546_v62, %v530_v45 }
 0x1d2   : > { %v552_v1 = vmul.f32 %v902_v61, %v547_v63  ;;  %v906_v61 = vld [vmem:[%s1136_s10] ss:$0 sm:$0xff] }
 0x1d4   : > { %v557_v2 = vadd.f32 %v903_v0, %v552_v1 }
 0x1d6   : > { %872 = vmatmul.msk.f32.vlgmr.msra.gmra.mxu1 %vm462_vm0, %v557_v2 }
 0x253   : > { %v586_v8 = vpop.f32.mrf.mxu1 }
 0x254   : > { %v587_v9 = vadd.f32 %v904_v7, %v586_v8 }
 0x256   : > { %v590_v10 = vsel %vm589_vm9, %v587_v9, 0.0  ;;  %874 = vmatmul.msk.f32.vlgmr.msra.gmra.mxu3 %vm605_vm10, %v587_v9 }
 0x257   : > { %v591_v11 = vrot.slane %v590_v10, 4 }
 0x259   : > { %v592_v12 = vadd.f32 %v591_v11, %v590_v10  ;;  %v766_v10 = vld [vmem:[%s1137_s11] sm:$0xff] }
 0x25a   : > { %790 = vmatpush.msrb.mxu3 %v766_v10 }
 0x25b   : > { %v593_v13 = vrot.slane %v592_v12, 2 }
 0x25d   : > { %v594_v14 = vadd.f32 %v593_v13, %v592_v12 }
 0x25f   : > { %v595_v15 = vrot.slane %v594_v14, 1 }
 0x261   : > { %v596_v16 = vadd.f32 %v595_v15, %v594_v14 }
 0x263   : > { %v597_v17 = vmul.f32 0.125, %v596_v16 }
 0x265   : > { %603 = vrot.lane.b32.xlu1 %v597_v17, %s967_s16 }
 0x2d7   : > { %v604_v18 = vpop.permute.xlu1 %603 }
 0x2d8   : > { %873 = vmatmul.msk.f32.vlgmr.msra.gmra.mxu2 %vm605_vm10, %v604_v18 }
 0x2d9   : > { %v649_v24 = vpop.f32.mrf.mxu3 }
 0x35b   : > { %v625_v21 = vpop.f32.mrf.mxu2 }
 0x35c   : > { %v628_v22 = vperm.slane %v625_v21, 0 }
 0x35e   : > { %v650_v25 = vadd.f32 %v649_v24, %v628_v22 }
 0x360   : > { %v656_v26 = vadd.f32 %v905_v23, %v650_v25 }
 0x362   : > { %v658_v27 = vmul.f32 0.70710677, %v656_v26  ;;  %v657_v58 = vmul.f32 0.5, %v656_v26 }
 0x364   : > { %v659_v28 = vand.u32 2147483647, %v658_v27  ;;  %vm692_vm15 = vcmp.lt.f32.partialorder %v658_v27, 0.0 }
 0x366   : > { %v660_v29 = vmul.f32 0.3275911, %v659_v28  ;;  %v686_v40 = vmul.f32 %v659_v28, %v659_v28 }
 0x368   : > { %v661_v30 = vadd.f32 1.0, %v660_v29  ;;  %v687_v44 = vsub.f32 0.0, %v686_v40 }
 0x36a   : > { %914 = vrcp.f32 %v661_v30  ;;  %v673_v34 = vand.u32 2147483648, %v661_v30  ;;  %v671_v36 = vand.u32 2147483647, %v661_v30  ;;  %vm667_vm12 = vweird.f32 %v661_v30 }
 0x36b   : > { %v688_v47 = vmul.f32 1.442695, %v687_v44 }
 0x36c   : > { %v674_v38 = vor.u32 1.1754944e-38, %v673_v34  ;;  %vm672_vm14 = vcmp.eq.f32.partialorder %v671_v36, 8.507059e+37 }
 0x36d   : > { %916 = vpow2.f32 %v688_v47 }
 0x370   : > { %v915_v31 = vpop.eup %914 }
 0x371   : > { %v663_v32 = vmul.f32 %v915_v31, %v661_v30  ;;  %vm668_vm11 = vweird.f32 %v915_v31 }
 0x372   : > { %vm669_vm13 = vmor %vm667_vm12, %vm668_vm11 }
 0x373   : > { %v664_v33 = vsub.f32 1.0, %v663_v32  ;;  %v917_v53 = vpop.eup %916 }
 0x375   : > { %v665_v35 = vmul.f32 %v915_v31, %v664_v33 }
 0x377   : > { %v666_v37 = vadd.f32 %v915_v31, %v665_v35  ;;  %v907_v35 = vld [vmem:[%s1138_s12] ss:$0 sm:$0xff] }
 0x379   : > { %v670_v39 = vsel %vm669_vm13, %v915_v31, %v666_v37 }
 0x37a   : > { %v675_v41 = vsel %vm672_vm14, %v674_v38, %v670_v39 }
 0x37b   : > { %v677_v42 = vmul.f32 1.0614054, %v675_v41 }
 0x37d   : > { %v678_v43 = vadd.f32 -1.4531521, %v677_v42 }
 0x37f   : > { %v679_v45 = vmul.f32 %v678_v43, %v675_v41 }
 0x381   : > { %v680_v46 = vadd.f32 1.4214138, %v679_v45 }
 0x383   : > { %v681_v48 = vmul.f32 %v680_v46, %v675_v41 }
 0x385   : > { %v682_v49 = vadd.f32 -0.28449672, %v681_v48 }
 0x387   : > { %v683_v50 = vmul.f32 %v682_v49, %v675_v41 }
 0x389   : > { %v684_v51 = vadd.f32 0.2548296, %v683_v50 }
 0x38b   : > { %v685_v52 = vmul.f32 %v684_v51, %v675_v41 }
 0x38d   : > { %v690_v54 = vmul.f32 %v917_v53, %v685_v52 }
 0x38f   : > { %v691_v55 = vsub.f32 1.0, %v690_v54 }
 0x391   : > { %v693_v56 = vsub.f32 0.0, %v691_v55 }
 0x393   : > { %v694_v57 = vsel %vm692_vm15, %v693_v56, %v691_v55 }
 0x394   : > { %v695_v59 = vadd.f32 1.0, %v694_v57 }
 0x396   : > { %v696_v60 = vmul.f32 %v695_v59, %v657_v58 }
 0x398   : > { %875 = vmatmul.msk.f32.vlgmr.msrb.gmra.mxu2 %vm605_vm10, %v696_v60 }
 0x41b   : > { %v723_v62 = vpop.f32.mrf.mxu2 }
 0x41c   : > { %v724_v63 = vadd.f32 %v906_v61, %v723_v62 }
 0x41e   : > { %v727_v0 = vmul.f32 0.70710677, %v724_v63  ;;  %v726_v32 = vmul.f32 0.5, %v724_v63 }
 0x420   : > { %v728_v1 = vand.u32 2147483647, %v727_v0  ;;  %vm761_vm4 = vcmp.lt.f32.partialorder %v727_v0, 0.0 }
 0x422   : > { %v729_v2 = vmul.f32 0.3275911, %v728_v1  ;;  %v755_v15 = vmul.f32 %v728_v1, %v728_v1 }
 0x424   : > { %v730_v3 = vadd.f32 1.0, %v729_v2  ;;  %v756_v18 = vsub.f32 0.0, %v755_v15 }
 0x426   : > { %918 = vrcp.f32 %v730_v3  ;;  %v742_v7 = vand.u32 2147483648, %v730_v3  ;;  %v740_v9 = vand.u32 2147483647, %v730_v3  ;;  %vm736_vm1 = vweird.f32 %v730_v3 }
 0x427   : > { %v757_v21 = vmul.f32 1.442695, %v756_v18 }
 0x428   : > { %v743_v12 = vor.u32 1.1754944e-38, %v742_v7  ;;  %vm741_vm3 = vcmp.eq.f32.partialorder %v740_v9, 8.507059e+37 }
 0x429   : > { %920 = vpow2.f32 %v757_v21 }
 0x42c   : > { %v919_v4 = vpop.eup %918 }
 0x42d   : > { %v732_v5 = vmul.f32 %v919_v4, %v730_v3  ;;  %vm737_vm0 = vweird.f32 %v919_v4 }
 0x42e   : > { %vm738_vm2 = vmor %vm736_vm1, %vm737_vm0 }
 0x42f   : > { %v733_v6 = vsub.f32 1.0, %v732_v5  ;;  %v921_v27 = vpop.eup %920 }
 0x431   : > { %v734_v8 = vmul.f32 %v919_v4, %v733_v6 }
 0x433   : > { %v735_v11 = vadd.f32 %v919_v4, %v734_v8 }
 0x435   : > { %v739_v13 = vsel %vm738_vm2, %v919_v4, %v735_v11 }
 0x436   : > { %v744_v14 = vsel %vm741_vm3, %v743_v12, %v739_v13 }
 0x437   : > { %v746_v16 = vmul.f32 1.0614054, %v744_v14 }
 0x439   : > { %v747_v17 = vadd.f32 -1.4531521, %v746_v16 }
 0x43b   : > { %v748_v19 = vmul.f32 %v747_v17, %v744_v14 }
 0x43d   : > { %v749_v20 = vadd.f32 1.4214138, %v748_v19 }
 0x43f   : > { %v750_v22 = vmul.f32 %v749_v20, %v744_v14 }
 0x441   : > { %v751_v23 = vadd.f32 -0.28449672, %v750_v22 }
 0x443   : > { %v752_v24 = vmul.f32 %v751_v23, %v744_v14 }
 0x445   : > { %v753_v25 = vadd.f32 0.2548296, %v752_v24 }
 0x447   : > { %v754_v26 = vmul.f32 %v753_v25, %v744_v14 }
 0x449   : > { %v759_v28 = vmul.f32 %v921_v27, %v754_v26 }
 0x44b   : > { %v760_v29 = vsub.f32 1.0, %v759_v28 }
 0x44d   : > { %v762_v30 = vsub.f32 0.0, %v760_v29 }
 0x44f   : > { %v763_v31 = vsel %vm761_vm4, %v762_v30, %v760_v29 }
 0x450   : > { %v764_v33 = vadd.f32 1.0, %v763_v31 }
 0x452   : > { %v765_v34 = vmul.f32 %v764_v33, %v726_v32 }
 0x454   : > { %876 = vmatmul.msk.f32.vlgmr.msrb.gmra.mxu3 %vm771_vm5, %v765_v34 }
 0x4d7   : > { %v792_v36 = vpop.f32.mrf.mxu3 }
 0x4d8   : > { %v793_v37 = vadd.f32 %v907_v35, %v792_v36 }
 0x4da   : > { %796 = vst.msk [vmem:[%s452_s18] sm:$0xff] %vm795_vm6, %v793_v37 }
 0x4db PF: > { %s24_s25 = sadd.s32 1, %s962_s25  }
 0x4dc   : > { %p21_p7 = scmp.ge.s32.totalorder %s24_s25, 4  }
 0x4de   :  { %23 = sbr.rel (!%p21_p7) target bundleno = 1 (0x1), region = 107 }
 0x4e3   :  { %816 = vsyncpa [#allocation3], 1 }
 0x4e4   :  { %818 = vsyncpa [#allocation3 + $0x1], 1 }

</bundles_post_ra>
